<compile_context>
chip_gen: v7x
topology: tpu7x:2x2x1
jax: 0.10.0
libtpu: 0.0.40
codegen_flags: <defaults>
</compile_context>

<pallas_src>
import functools

import jax
import jax.numpy as jnp
from jax.experimental import pallas as pl
from jax.experimental.pallas import tpu as pltpu

LANES = 128
SUBLANES = 8
BLOCK_BYTES = 2 * 1024 * 1024  # per-input, per-buffer byte budget for a block


def _round_up(x, m):
    return ((x + m - 1) // m) * m


def _mse_kernel(pred_ref, real_ref, out_ref, acc_ref, *,
                rows, tile_rows, half_blocks):
    c = pl.program_id(0)   # core-split axis ("parallel")
    i = pl.program_id(1)   # reduction axis ("arbitrary")

    @pl.when(i == 0)
    def _():
        acc_ref[...] = jnp.zeros_like(acc_ref)

    # Logical block this step covers.  The index_map clamps the (possibly)
    # out-of-range duplicated tail block of the 2-way core split; the mask
    # below zeroes out any rows past `rows`, including that duplicate and the
    # ragged tail of the last genuine block.
    block = c * half_blocks + i
    start_row = block * tile_rows
    row_ids = start_row + jax.lax.broadcasted_iota(
        jnp.int32, (tile_rows, LANES), 0)
    valid = row_ids < rows

    # Hot path: elementwise diff + square (VPU), masked, folded down to a
    # single (8, 128) vreg-shaped accumulator with VPU adds only.
    d = real_ref[...].astype(jnp.float32) - pred_ref[...].astype(jnp.float32)
    sq = jnp.where(valid, d * d, jnp.float32(0.0))
    acc_ref[...] += sq.reshape(tile_rows // SUBLANES, SUBLANES, LANES).sum(axis=0)

    # Epilogue (once per core): full XLU reduce of the vector accumulator and
    # a single scalar store.
    @pl.when(i == pl.num_programs(1) - 1)
    def _():
        out_ref[0, 0] = jnp.sum(acc_ref[...])


def mse_pallas(pred, real):
    assert pred.shape == real.shape, "pred/real must have identical shapes"
    n = pred.size  # torch.numel(diffs)

    pred_f = pred.reshape(-1)
    real_f = real.reshape(-1)

    # Only pad the (< 128 element) remainder so the free 2-D view is legal.
    # Padding zeros contribute (0-0)^2 = 0; we divide by the original n.
    if n % LANES != 0:
        pad = LANES - (n % LANES)
        pred_f = jnp.pad(pred_f, (0, pad))
        real_f = jnp.pad(real_f, (0, pad))

    rows = pred_f.size // LANES
    pred2d = pred_f.reshape(rows, LANES)
    real2d = real_f.reshape(rows, LANES)

    # Tile rows: byte-budgeted max, clamped for small inputs, kept a multiple
    # of the dtype's sublane packing (8 for 32-bit, 16 for bf16, 32 for 8-bit).
    itemsize = jnp.dtype(pred.dtype).itemsize
    row_mult = SUBLANES * max(1, 4 // max(1, itemsize))
    tile_rows_max = max(row_mult, (BLOCK_BYTES // (LANES * itemsize)) // row_mult * row_mult)
    tile_rows = min(tile_rows_max, _round_up(rows, row_mult))

    total_blocks = pl.cdiv(rows, tile_rows)
    num_cores = 2 if total_blocks >= 2 else 1   # avoid duplicate DMA for tiny inputs
    half_blocks = pl.cdiv(total_blocks, num_cores)  # blocks per core

    # Clamp the block index so the (possibly) out-of-range tail block of the
    # 2-way split DMAs valid data; the kernel masks its contribution to zero.
    def in_idx(c, i):
        return (jnp.minimum(c * half_blocks + i, total_blocks - 1), 0)

    kernel = functools.partial(
        _mse_kernel, rows=rows, tile_rows=tile_rows, half_blocks=half_blocks)

    partials = pl.pallas_call(
        kernel,
        out_shape=jax.ShapeDtypeStruct((num_cores, 1), jnp.float32),
        grid_spec=pltpu.PrefetchScalarGridSpec(
            num_scalar_prefetch=0,
            grid=(num_cores, half_blocks),
            in_specs=[
                pl.BlockSpec((tile_rows, LANES), in_idx),
                pl.BlockSpec((tile_rows, LANES), in_idx),
            ],
            # One (1,1) SMEM partial per core; resident across the reduction.
            out_specs=pl.BlockSpec(
                (1, 1), lambda c, i: (c, 0), memory_space=pltpu.SMEM),
            scratch_shapes=[pltpu.VMEM((SUBLANES, LANES), jnp.float32)],
        ),
        compiler_params=pltpu.CompilerParams(
            dimension_semantics=("parallel", "arbitrary"),
            # ~8 MiB of pipeline buffers + elementwise temps: headroom on v5e
            # (16 MiB scoped default) while staying well under v7x's 64 MiB
            # physical VMEM.
            vmem_limit_bytes=32 * 1024 * 1024,
        ),
    )(pred2d, real2d)

    # Combine the per-core partial sums and normalize by the ORIGINAL n.
    return jnp.sum(partials) / jnp.float32(n)


if __name__ == "__main__":
    key = jax.random.PRNGKey(0)
    k1, k2 = jax.random.split(key)
    # Small shape consistent with a typical NCHW activation tensor.
    shape = (2, 4, 16, 16)
    pred = jax.random.normal(k1, shape, dtype=jnp.float32)
    real = jax.random.normal(k2, shape, dtype=jnp.float32)

    mse = mse_pallas(pred, real)
    jax.block_until_ready(mse)

    # Reference: mean of (real - pred)^2 over all elements (torch semantics).
    ref = jnp.mean((real - pred) ** 2)
    assert jnp.allclose(mse, ref, rtol=1e-5, atol=1e-6), (mse, ref)

    print("KERNEL_OK")
</pallas_src>

<mosaic_0001>
module attributes {stable_mosaic.version = 11 : i64} {
  func.func @_mse_kernel(%arg0: i32, %arg1: i32, %arg2: memref<16x128xf32, #tpu.memory_space<vmem>>, %arg3: memref<16x128xf32, #tpu.memory_space<vmem>>, %arg4: memref<1x1xf32, #tpu.memory_space<smem>>, %arg5: memref<8x128xf32, #tpu.memory_space<vmem>>) attributes {dimension_semantics = [#tpu.dimension_semantics<parallel>, #tpu.dimension_semantics<arbitrary>], iteration_bounds = array<i64: 1, 1>, scalar_prefetch = 0 : i64, scratch_operands = 1 : i64, tpu.core_type = #tpu.core_type<tc>, window_params = [{transform_indices = @transform_0, window_bounds = array<i64: 16, 128>}, {transform_indices = @transform_1, window_bounds = array<i64: 16, 128>}, {transform_indices = @transform_2, window_bounds = array<i64: 1, 1>}]} {
    %c0_i32 = arith.constant 0 : i32
    %0 = arith.cmpi eq, %arg1, %c0_i32 : i32
    %1 = arith.extui %0 : i1 to i32
    %c0_i32_0 = arith.constant 0 : i32
    %2 = arith.cmpi ne, %1, %c0_i32_0 : i32
    scf.if %2 {
      %cst_12 = arith.constant 0.000000e+00 : f32
      %25 = vector.broadcast %cst_12 : f32 to vector<8x128xf32>
      %c0_13 = arith.constant 0 : index
      %c0_14 = arith.constant 0 : index
      %26 = vector.load %arg5[%c0_13, %c0_14] : memref<8x128xf32, #tpu.memory_space<vmem>>, vector<8x128xf32>
      tpu.vector_store %arg5[%c0_13, %c0_14], %25 {strides = array<i32>} : memref<8x128xf32, #tpu.memory_space<vmem>>, vector<8x128xf32>,
    } else {
    }
    %c1_i32 = arith.constant 1 : i32
    %3 = arith.muli %arg0, %c1_i32 : i32
    %4 = arith.addi %3, %arg1 : i32
    %c16_i32 = arith.constant 16 : i32
    %5 = arith.muli %4, %c16_i32 : i32
    %6 = tpu.iota {dimensions = array<i32: 0>} : vector<16x128xi32>
    %7 = vector.broadcast %5 : i32 to vector<16x128xi32>
    %8 = arith.addi %7, %6 : vector<16x128xi32>
    %c16_i32_1 = arith.constant 16 : i32
    %9 = vector.broadcast %c16_i32_1 : i32 to vector<16x128xi32>
    %10 = arith.cmpi slt, %8, %9 : vector<16x128xi32>
    %c0 = arith.constant 0 : index
    %c0_2 = arith.constant 0 : index
    %11 = vector.load %arg3[%c0, %c0_2] : memref<16x128xf32, #tpu.memory_space<vmem>>, vector<16x128xf32>
    %c0_3 = arith.constant 0 : index
    %c0_4 = arith.constant 0 : index
    %12 = vector.load %arg2[%c0_3, %c0_4] : memref<16x128xf32, #tpu.memory_space<vmem>>, vector<16x128xf32>
    %13 = arith.subf %11, %12 : vector<16x128xf32>
    %14 = arith.mulf %13, %13 : vector<16x128xf32>
    %cst = arith.constant 0.000000e+00 : f32
    %15 = vector.broadcast %cst : f32 to vector<16x128xf32>
    %16 = arith.select %10, %14, %15 : vector<16x128xi1>, vector<16x128xf32>
    %c0_5 = arith.constant 0 : index
    %c0_6 = arith.constant 0 : index
    %17 = vector.load %arg5[%c0_5, %c0_6] : memref<8x128xf32, #tpu.memory_space<vmem>>, vector<8x128xf32>
    %18 = vector.shape_cast %16 : vector<16x128xf32> to vector<2x8x128xf32>
    %cst_7 = arith.constant dense<0.000000e+00> : vector<8x128xf32>
    %19 = vector.multi_reduction <add>, %18, %cst_7 [0] : vector<2x8x128xf32> to vector<8x128xf32>
    %20 = arith.addf %17, %19 : vector<8x128xf32>
    %c0_8 = arith.constant 0 : index
    %c0_9 = arith.constant 0 : index
    %21 = vector.load %arg5[%c0_8, %c0_9] : memref<8x128xf32, #tpu.memory_space<vmem>>, vector<8x128xf32>
    tpu.vector_store %arg5[%c0_8, %c0_9], %20 {strides = array<i32>} : memref<8x128xf32, #tpu.memory_space<vmem>>, vector<8x128xf32>,
    %c0_i32_10 = arith.constant 0 : i32
    %22 = arith.cmpi eq, %arg1, %c0_i32_10 : i32
    %23 = arith.extui %22 : i1 to i32
    %c0_i32_11 = arith.constant 0 : i32
    %24 = arith.cmpi ne, %23, %c0_i32_11 : i32
    scf.if %24 {
      %c0_12 = arith.constant 0 : index
      %c0_13 = arith.constant 0 : index
      %25 = vector.load %arg5[%c0_12, %c0_13] : memref<8x128xf32, #tpu.memory_space<vmem>>, vector<8x128xf32>
      %26 = vector.shape_cast %25 : vector<8x128xf32> to vector<1x8x128xf32>
      %cst_14 = arith.constant dense<0.000000e+00> : vector<1xf32>
      %27 = vector.multi_reduction <add>, %26, %cst_14 [1, 2] : vector<1x8x128xf32> to vector<1xf32>
      %28 = vector.shape_cast %27 : vector<1xf32> to vector<1x1x1xf32>
      %29 = vector.extract %28[0, 0, 0] : f32 from vector<1x1x1xf32>
      %c0_15 = arith.constant 0 : index
      %c0_16 = arith.constant 0 : index
      %30 = memref.load %arg4[%c0_15, %c0_16] : memref<1x1xf32, #tpu.memory_space<smem>>
      memref.store %29, %arg4[%c0_15, %c0_16] : memref<1x1xf32, #tpu.memory_space<smem>>
    } else {
    }
    return
  }
  func.func @transform_0(%arg0: i32, %arg1: i32) -> (i32, i32) {
    %c1_i32 = arith.constant 1 : i32
    %0 = arith.muli %arg0, %c1_i32 : i32
    %1 = arith.addi %0, %arg1 : i32
    %c0_i32 = arith.constant 0 : i32
    %2 = arith.minsi %1, %c0_i32 : i32
    %c0_i32_0 = arith.constant 0 : i32
    %c0_i32_1 = arith.constant 0 : i32
    return %2, %c0_i32_0 : i32, i32
  }
  func.func @transform_1(%arg0: i32, %arg1: i32) -> (i32, i32) {
    %c1_i32 = arith.constant 1 : i32
    %0 = arith.muli %arg0, %c1_i32 : i32
    %1 = arith.addi %0, %arg1 : i32
    %c0_i32 = arith.constant 0 : i32
    %2 = arith.minsi %1, %c0_i32 : i32
    %c0_i32_0 = arith.constant 0 : i32
    %c0_i32_1 = arith.constant 0 : i32
    return %2, %c0_i32_0 : i32, i32
  }
  func.func @transform_2(%arg0: i32, %arg1: i32) -> (i32, i32) {
    %c0_i32 = arith.constant 0 : i32
    %c0_i32_0 = arith.constant 0 : i32
    return %arg0, %c0_i32 : i32, i32
  }
}

</mosaic_0001>

<bundles_post_ra>
// kernel: tpu_custom_call.1
= control target key start
LH: loop header
LB: loop body
LE: loop exit
PB: predicated region body
PF: predicated region fallthrough
CT: control target
= control target key end

     0   :  { %7 = vsyncpa [#allocation4], 0  ;;  %s246_s0 = inlined_call_operand.hbm [shape: f32[16,128], index: 0, kind: input, shape index: {}]   ;;  %s247_s1 = inlined_call_operand.hbm [shape: f32[16,128], index: 1, kind: input, shape index: {}]   ;;  %s248_s2 = inlined_call_operand.hbm [shape: f32[1,1], index: 2, kind: output, shape index: {}]  }
   0x1   :  { %8 = vsyncpa [#allocation7], 0 }
   0x2   :  { %9 = vsyncpa [#allocation5], 0  ;;  %s190_s9 = smov [#allocation3]   ;;  %s130_s13 = scalar_lea.hbm %s246_s0, 256 }
   0x3   :  { %s21_s10 = sshll.u32 %s190_s9, 4  ;;  %p131_p0 = scmp.ne.s32.totalorder %s246_s0, %s130_s13  ;;  %s22_s10 = int_to_ptr.vmem [resolvable:$true] %s21_s10 }
   0x4   :  { %p134_p1 = scmp.lt.u32.totalorder %s130_s13, %s246_s0 }
   0x6   :  { %p136_p2 = pnand %p134_p1, %p131_p0 }
   0x8   :  { %139 = shalt.err (!%p136_p2)
}
   0x9   :  { %s140_s18 = scalar_lea.vmem %s22_s10, 256  ;;  %p145_p4 = scmp.lt.s32.totalorder %s22_s10, %s22_s10 }
   0xa   :  { %p141_p3 = scmp.ne.s32.totalorder %s22_s10, %s140_s18  ;;  %p146_p5 = scmp.lt.s32.totalorder %s140_s18, %s140_s18 }
   0xc   :  { %p147_p6 = por %p146_p5, %p145_p4 }
   0xe   :  { %p148_p7 = pnand %p147_p6, %p141_p3 }
  0x10   :  { %151 = shalt.err (!%p148_p7)
}
  0x11   :  { %s191_s19 = smov 128   ;;  %s192_s20 = smov 8  }
  0x12   :  { %27 = dma.hbm_to_vmem [thread:$0]  %s246_s0, 256, %s22_s10, [#allocation4], %s191_s19, %s191_s19, %s192_s20  }
  0x13   :  { %s193_s23 = smov [#allocation6]   ;;  %s152_s27 = scalar_lea.hbm %s247_s1, 256 }
  0x14   :  { %s39_s24 = sshll.u32 %s193_s23, 4  ;;  %p153_p8 = scmp.ne.s32.totalorder %s247_s1, %s152_s27  ;;  %s40_s24 = int_to_ptr.vmem [resolvable:$true] %s39_s24 }
  0x15   :  { %p156_p9 = scmp.lt.u32.totalorder %s152_s27, %s247_s1 }
  0x17   :  { %p158_p10 = pnand %p156_p9, %p153_p8 }
  0x19   :  { %161 = shalt.err (!%p158_p10)
}
  0x1a   :  { %s162_s4 = scalar_lea.vmem %s40_s24, 256  ;;  %p167_p12 = scmp.lt.s32.totalorder %s40_s24, %s40_s24 }
  0x1b   :  { %p163_p11 = scmp.ne.s32.totalorder %s40_s24, %s162_s4  ;;  %p168_p13 = scmp.lt.s32.totalorder %s162_s4, %s162_s4 }
  0x1d   :  { %p169_p0 = por %p168_p13, %p167_p12 }
  0x1f   :  { %p170_p1 = pnand %p169_p0, %p163_p11 }
  0x21   :  { %173 = shalt.err (!%p170_p1)
}
  0x22   :  { %45 = dma.hbm_to_vmem [thread:$0]  %s247_s1, 256, %s40_s24, [#allocation7], %s191_s19, %s191_s19, %s192_s20  }
  0x23   :  { %184 = dma.done.wait [#allocation4], 256  }
  0x24   :  { %185 = vsyncadd [#allocation4], 4294967040 }
  0x25   :  { %186 = dma.done.wait [#allocation7], 256  }
  0x26   :  { %187 = vsyncadd [#allocation7], 4294967040  ;;  %v75_v0 = vld [vmem:[#allocation6] sm:$0xff]  ;;  %v76_v1 = vld [vmem:[#allocation6 + $0x8] sm:$0xff]  ;;  %s174_s8 = scalar_lea.hbm %s248_s2, 16 }
  0x27   :  { %v77_v2 = vld [vmem:[#allocation3] sm:$0xff]  ;;  %v78_v3 = vld [vmem:[#allocation3 + $0x8] sm:$0xff]  ;;  %p175_p2 = scmp.ne.s32.totalorder %s248_s2, %s174_s8  ;;  %p178_p3 = scmp.lt.u32.totalorder %s174_s8, %s248_s2 }
  0x28   :  { %v79_v4 = vsub.f32 %v75_v0, %v77_v2  ;;  %v80_v5 = vsub.f32 %v76_v1, %v78_v3 }
  0x29   :  { %p180_p4 = pnand %p178_p3, %p175_p2 }
  0x2a   :  { %v81_v6 = vmul.f32 %v79_v4, %v79_v4  ;;  %v82_v7 = vmul.f32 %v80_v5, %v80_v5 }
  0x2c   :  { %v86_v8 = vadd.f32 %v82_v7, %v81_v6 }
  0x2e   :  { %93 = vadd.xlane.f32.xlu0 %v86_v8 }
  0xbb   :  { %v94_v9 = vpop.xlane.xlu0 %93 }
  0xbc   :  { %v95_v10 = vrot.slane %v94_v9, 4 }
  0xbe   :  { %v96_v11 = vadd.f32 %v95_v10, %v94_v9 }
  0xc0   :  { %v97_v12 = vrot.slane %v96_v11, 2 }
  0xc2   :  { %v98_v13 = vadd.f32 %v97_v12, %v96_v11 }
  0xc4   :  { %v99_v14 = vrot.slane %v98_v13, 1 }
  0xc6   :  { %v100_v15 = vadd.f32 %v99_v14, %v98_v13 }
  0xc8   :  { %123 = vpush %v100_v15 }
  0xf9   :  { %s124_s1 = spop %123 }
  0xfa   :  { %103 = sst [smem:[#allocation8]] %s124_s1 }
  0xfb   :  { %183 = shalt.err (!%p180_p4)
}
  0xfc   :  { %s194_s13 = smov [#allocation8]  }
  0xfd   :  { %111 = dma.smem_to_hbm %s194_s13, 16, %s248_s2, [#allocation5]  }
  0xfe   :  { %188 = dma.done.wait [#allocation5], 16  }
  0xff   :  { %189 = vsyncadd [#allocation5], 4294967280 }
 0x100   :  { %115 = sfence }
 0x101   :  { %116 = vsyncpa [#allocation4], 1 }
 0x102   :  { %117 = vsyncpa [#allocation7], 1 }
 0x103   :  { %118 = vsyncpa [#allocation5], 1 }

</bundles_post_ra>
